<compile_context>
chip_gen: v5e
topology: v5e:2x2
jax: 0.10.0
libtpu: 0.0.40
codegen_flags: <defaults>
</compile_context>

<pallas_src>
import jax
import jax.numpy as jnp
from jax.experimental import pallas as pl
from jax.experimental.pallas import tpu as pltpu


def _pick_block_b(B, N, Fin, nhid, Fout):
    """Batch-block size: fill the MXU M-dim (BB*N >= 256 target for v6e/v7x),
    keep >= 2 parallel grid steps so v7x's two TensorCores both get work, and stay
    inside a conservative per-step VMEM budget (safe for v5e's 16 MiB scoped default
    and v7x's 64 MiB physical VMEM)."""
    bb = min(B, max(1, pl.cdiv(256, N)))
    if B >= 2:
        bb = min(bb, max(1, B // 2))              # >= 2 grid steps for megacore/v7x
    per_b = (N * Fin * 4 + N * N * 2 + N * 128 * 4        # feats, att(bf16), mvec (lane-padded)
             + 3 * N * Fout * 4                           # h2 / hp-class f32 temporaries
             + 8 * (nhid + 2 * Fout) * 4)                 # hmm rows + out (sublane-padded)
    budget = 8 << 20
    while bb > 1 and 2 * bb * per_b > budget:
        bb //= 2
    while B % bb:                                          # force divisibility (no padded blocks)
        bb -= 1
    return bb


def _gat_fused_kernel(feats_ref, att_ref, mvec_ref, hmm1_ref, hmm2_ref,
                      wf1_ref, bf1_ref, wf2_ref, bf2_ref, out_ref):
    bb, n, fin = feats_ref.shape
    nhid = wf1_ref.shape[1]
    fout = wf2_ref.shape[1]

    att = att_ref[...]                                     # (bb, n, n) bf16, row-normalized adjacency

    # ---- layer 1: shared-weight projection as ONE (bb*n, Fin)@(Fin, nhid) MXU matmul
    f = feats_ref[...].astype(jnp.bfloat16).reshape(bb * n, fin)
    h1 = jnp.dot(f, wf1_ref[...], preferred_element_type=jnp.float32) + bf1_ref[...]
    h1 = h1.reshape(bb, n, nhid) + hmm1_ref[...]           # + pre-projected multimodal row

    # ---- layer 1 aggregation: softmax over the adjacency mask is provably uniform
    #      1/deg(i), so att is simply the pre-normalized adjacency.
    hp1 = jnp.einsum("bij,bjf->bif", att, h1.astype(jnp.bfloat16),
                     preferred_element_type=jnp.float32)   # (bb, n, nhid)

    # ---- fused F.elu (exp only on the clamped non-positive branch; f32 VPU/EUP)
    x = jnp.where(hp1 > 0, hp1, jnp.exp(jnp.minimum(hp1, 0.0)) - 1.0)

    # ---- layer 2: ONE (bb*n, nhid)@(nhid, 768) MXU matmul
    h2 = jnp.dot(x.astype(jnp.bfloat16).reshape(bb * n, nhid), wf2_ref[...],
                 preferred_element_type=jnp.float32) + bf2_ref[...]
    h2 = h2.reshape(bb, n, fout) + hmm2_ref[...]

    # ---- layer 2 aggregation fused with the final x.mean(dim=1):
    #      mean_i (att @ h2)[i, :] == colmean(att) @ h2; mvec holds colmean(att) in f32.
    #      Broadcast-multiply (VPU) + sublane reduce (XLU) — no (N,N)@(N,768) matmul.
    out_ref[...] = jnp.sum(mvec_ref[...] * h2, axis=1, keepdims=True)   # (bb, 1, 768)


def gat_forward(multimodal, features, adj, params, *, block_b=None):
    """GAT.forward.  Dropout(p=0.6) is modeled as identity (eval mode)."""
    # TODO(synk): F.dropout(training=True) is stochastic; treated as identity here.
    wf1, bf1, wm1, bm1, aw1, ab1 = params["layer1"]
    wf2, bf2, wm2, bm2, aw2, ab2 = params["layer2"]
    # aw*/ab* (the per-layer `attn` Linear) provably never affect the output: the
    # attention logits are constant along the softmax axis, so the masked softmax is
    # exactly uniform 1/deg(i).  They are kept in `params` only for interface parity.
    del aw1, ab1, aw2, ab2

    feats = jnp.squeeze(features, axis=2) if features.ndim == 4 else features
    feats = feats.astype(jnp.float32)
    B, N, Fin = feats.shape
    nhid = wf1.shape[0]                                    # torch Linear weight is (out, in)
    Fout = wf2.shape[0]                                    # 768

    # ---- hoisted to XLA: adaptive_avg_pool2d(.., (1,1)) == spatial mean, then both
    # fc_multimodal projections as single batched (B,768)@(768,F) matmuls.
    pooled = jnp.mean(multimodal, axis=(2, 3))             # (B, 768)
    hmm1 = (pooled @ wm1.T + bm1).reshape(B, 1, nhid)      # (B, 1, nhid)
    hmm2 = (pooled @ wm2.T + bm2).reshape(B, 1, Fout)      # (B, 1, 768)

    # ---- hoisted to XLA: degenerate softmax.  softmax(where(adj>0, e_i, -9e15), -1)
    # equals mask/rowsum(mask) exactly in f32 (masked entries underflow to 0); rows
    # with no neighbours reduce to uniform 1/N, matching softmax of an all-masked row.
    # Both layers share this matrix.
    mask = (adj > 0).astype(jnp.float32)                   # (B, N, N)
    deg = jnp.sum(mask, axis=-1, keepdims=True)
    att = jnp.where(deg > 0, mask / jnp.maximum(deg, 1.0), 1.0 / N)
    att_bf16 = att.astype(jnp.bfloat16)                    # the only O(N^2) HBM operand
    # Column-mean of att folds the final x.mean(dim=1) into the layer-2 aggregation.
    mvec = jnp.mean(att, axis=1)[..., None]                # (B, N, 1) f32

    bb = _pick_block_b(B, N, Fin, nhid, Fout) if block_b is None else block_b
    grid = (B // bb,)

    out = pl.pallas_call(
        _gat_fused_kernel,
        out_shape=jax.ShapeDtypeStruct((B, 1, Fout), jnp.float32),
        grid_spec=pltpu.PrefetchScalarGridSpec(
            num_scalar_prefetch=0,
            grid=grid,
            in_specs=[
                pl.BlockSpec((bb, N, Fin), lambda i: (i, 0, 0)),     # node features
                pl.BlockSpec((bb, N, N), lambda i: (i, 0, 0)),       # normalized adjacency (bf16)
                pl.BlockSpec((bb, N, 1), lambda i: (i, 0, 0)),       # colmean(att) (f32)
                pl.BlockSpec((bb, 1, nhid), lambda i: (i, 0, 0)),    # h_multimodal, layer 1
                pl.BlockSpec((bb, 1, Fout), lambda i: (i, 0, 0)),    # h_multimodal, layer 2
                # Grid-invariant weights (bf16 MXU operands) and biases (f32).
                # TODO(synk): pipeline_mode=pl.Buffered(1) on these constants would buy
                # back a little VMEM headroom on v7x once BB grows; skipped for safety.
                pl.BlockSpec((Fin, nhid), lambda i: (0, 0)),         # W_features1^T (bf16)
                pl.BlockSpec((1, nhid), lambda i: (0, 0)),           # b_features1
                pl.BlockSpec((nhid, Fout), lambda i: (0, 0)),        # W_features2^T (bf16)
                pl.BlockSpec((1, Fout), lambda i: (0, 0)),           # b_features2
            ],
            out_specs=pl.BlockSpec((bb, 1, Fout), lambda i: (i, 0, 0)),
        ),
        compiler_params=pltpu.CompilerParams(dimension_semantics=("parallel",)),
    )(feats, att_bf16, mvec, hmm1, hmm2,
      wf1.T.astype(jnp.bfloat16), bf1.reshape(1, nhid),
      wf2.T.astype(jnp.bfloat16), bf2.reshape(1, Fout))

    return jnp.squeeze(out, axis=1)                        # (B, 768)


# ---------------- pure-JAX reference (mirrors the torch ops literally, f32) ----------------
def _ref_layer(mm, feats, adj, wf, bf, wm, bm, aw, ab):
    hm = jnp.mean(mm, axis=(2, 3))                          # adaptive_avg_pool2d -> (B,768)
    hm = hm @ wm.T + bm
    hm = hm[:, None, :]
    if feats.ndim == 4:
        feats = jnp.squeeze(feats, axis=2)
    hf = feats @ wf.T + bf
    h = hf + hm                                             # (B,N,F)
    N = h.shape[1]
    a_in = jnp.concatenate(
        [jnp.repeat(h[:, :, None, :], N, axis=2),
         jnp.repeat(h[:, None, :, :], N, axis=1)], axis=-1).sum(axis=2)
    e = a_in @ aw.T + ab                                    # (B,N,1)
    e = jnp.where(e > 0, e, 0.01 * e)                       # leaky_relu
    att = jnp.where(adj > 0, e, jnp.float32(-9e15))
    att = jax.nn.softmax(att, axis=-1)
    return jnp.einsum("bij,bjf->bif", att, h)


def _ref_gat(multimodal, features, adj, params):
    x = jax.nn.elu(_ref_layer(multimodal, features, adj, *params["layer1"]))
    x = _ref_layer(multimodal, x, adj, *params["layer2"])
    return jnp.mean(x, axis=1)


if __name__ == "__main__":
    key = jax.random.PRNGKey(0)
    B, N, nfeat, nhid = 2, 8, 32, 32
    H = W = 4
    ks = jax.random.split(key, 16)

    def linear(kw, kb, fin, fout):
        w = jax.random.normal(kw, (fout, fin), jnp.float32) * 0.05
        b = jax.random.normal(kb, (fout,), jnp.float32) * 0.05
        return w, b

    # GraphAttentionLayer(nfeat, nhid)
    wf1, bf1 = linear(ks[0], ks[1], nfeat, nhid)
    wm1, bm1 = linear(ks[2], ks[3], 768, nhid)
    aw1, ab1 = linear(ks[4], ks[5], 2 * nhid, 1)
    # GraphAttentionLayer(nhid, 768)
    wf2, bf2 = linear(ks[6], ks[7], nhid, 768)
    wm2, bm2 = linear(ks[8], ks[9], 768, 768)
    aw2, ab2 = linear(ks[10], ks[11], 2 * 768, 1)

    params = {
        "layer1": (wf1, bf1, wm1, bm1, aw1, ab1),
        "layer2": (wf2, bf2, wm2, bm2, aw2, ab2),
    }

    multimodal = jax.random.normal(ks[12], (B, 768, H, W), jnp.float32)   # NCHW
    features = jax.random.normal(ks[13], (B, N, 1, nfeat), jnp.float32)
    adj = (jax.random.uniform(ks[14], (B, N, N)) > 0.4).astype(jnp.float32)
    adj = jnp.maximum(adj, jnp.eye(N, dtype=jnp.float32)[None])           # self loops

    out = jax.block_until_ready(gat_forward(multimodal, features, adj, params))
    ref = _ref_gat(multimodal, features, adj, params)

    assert out.shape == (B, 768), out.shape
    # bf16 MXU operands (f32 accumulation) -> slightly looser tolerance than pure-f32
    assert jnp.allclose(out, ref, rtol=2e-2, atol=2e-2), float(jnp.max(jnp.abs(out - ref)))
    print("KERNEL_OK")
</pallas_src>

<mosaic_0001>
module attributes {stable_mosaic.version = 11 : i64} {
  func.func @_gat_fused_kernel(%arg0: i32, %arg1: memref<1x8x32xf32, #tpu.memory_space<vmem>>, %arg2: memref<1x8x8xbf16, #tpu.memory_space<vmem>>, %arg3: memref<1x8x1xf32, #tpu.memory_space<vmem>>, %arg4: memref<1x1x32xf32, #tpu.memory_space<vmem>>, %arg5: memref<1x1x768xf32, #tpu.memory_space<vmem>>, %arg6: memref<32x32xbf16, #tpu.memory_space<vmem>>, %arg7: memref<1x32xf32, #tpu.memory_space<vmem>>, %arg8: memref<32x768xbf16, #tpu.memory_space<vmem>>, %arg9: memref<1x768xf32, #tpu.memory_space<vmem>>, %arg10: memref<1x1x768xf32, #tpu.memory_space<vmem>>) attributes {dimension_semantics = [#tpu.dimension_semantics<parallel>], iteration_bounds = array<i64: 2>, scalar_prefetch = 0 : i64, scratch_operands = 0 : i64, tpu.core_type = #tpu.core_type<tc>, window_params = [{transform_indices = @transform_0, window_bounds = array<i64: 1, 8, 32>}, {transform_indices = @transform_1, window_bounds = array<i64: 1, 8, 8>}, {transform_indices = @transform_2, window_bounds = array<i64: 1, 8, 1>}, {transform_indices = @transform_3, window_bounds = array<i64: 1, 1, 32>}, {transform_indices = @transform_4, window_bounds = array<i64: 1, 1, 768>}, {pipeline_mode = #tpu.pipeline_mode<synchronous>, transform_indices = @transform_5, window_bounds = array<i64: 32, 32>}, {pipeline_mode = #tpu.pipeline_mode<synchronous>, transform_indices = @transform_6, window_bounds = array<i64: 1, 32>}, {pipeline_mode = #tpu.pipeline_mode<synchronous>, transform_indices = @transform_7, window_bounds = array<i64: 32, 768>}, {pipeline_mode = #tpu.pipeline_mode<synchronous>, transform_indices = @transform_8, window_bounds = array<i64: 1, 768>}, {transform_indices = @transform_9, window_bounds = array<i64: 1, 1, 768>}]} {
    %c0 = arith.constant 0 : index
    %c0_0 = arith.constant 0 : index
    %c0_1 = arith.constant 0 : index
    %0 = vector.load %arg2[%c0, %c0_0, %c0_1] : memref<1x8x8xbf16, #tpu.memory_space<vmem>>, vector<1x8x8xbf16>
    %c0_2 = arith.constant 0 : index
    %c0_3 = arith.constant 0 : index
    %c0_4 = arith.constant 0 : index
    %1 = vector.load %arg1[%c0_2, %c0_3, %c0_4] : memref<1x8x32xf32, #tpu.memory_space<vmem>>, vector<1x8x32xf32>
    %2 = arith.truncf %1 : vector<1x8x32xf32> to vector<1x8x32xbf16>
    %3 = vector.shape_cast %2 : vector<1x8x32xbf16> to vector<8x32xbf16>
    %c0_5 = arith.constant 0 : index
    %c0_6 = arith.constant 0 : index
    %4 = vector.load %arg6[%c0_5, %c0_6] : memref<32x32xbf16, #tpu.memory_space<vmem>>, vector<32x32xbf16>
    %cst = arith.constant dense<0.000000e+00> : vector<8x32xf32>
    %5 = tpu.matmul %3, %4, %cst {dimension_numbers = #tpu.dot_dimension_numbers<[1], [0], [0], [1], [0, 0, 1, 1], [], []>} : vector<8x32xbf16>, vector<32x32xbf16>, vector<8x32xf32> -> vector<8x32xf32>
    %c0_7 = arith.constant 0 : index
    %c0_8 = arith.constant 0 : index
    %6 = vector.load %arg7[%c0_7, %c0_8] : memref<1x32xf32, #tpu.memory_space<vmem>>, vector<1x32xf32>
    %7 = vector.broadcast %6 : vector<1x32xf32> to vector<8x32xf32>
    %8 = arith.addf %5, %7 : vector<8x32xf32>
    %9 = vector.shape_cast %8 : vector<8x32xf32> to vector<1x8x32xf32>
    %c0_9 = arith.constant 0 : index
    %c0_10 = arith.constant 0 : index
    %c0_11 = arith.constant 0 : index
    %10 = vector.load %arg4[%c0_9, %c0_10, %c0_11] : memref<1x1x32xf32, #tpu.memory_space<vmem>>, vector<1x1x32xf32>
    %11 = vector.broadcast %10 : vector<1x1x32xf32> to vector<1x8x32xf32>
    %12 = arith.addf %9, %11 : vector<1x8x32xf32>
    %13 = arith.truncf %12 : vector<1x8x32xf32> to vector<1x8x32xbf16>
    "tpu.trace_start"() <{level = 10 : i32, message = "bij,bjf->bif"}> : () -> ()
    %cst_12 = arith.constant dense<0.000000e+00> : vector<1x8x32xf32>
    %14 = tpu.matmul %0, %13, %cst_12 {dimension_numbers = #tpu.dot_dimension_numbers<[2], [1], [1], [2], [0, 0, 0, 1, 1, 2], [0], [0]>} : vector<1x8x8xbf16>, vector<1x8x32xbf16>, vector<1x8x32xf32> -> vector<1x8x32xf32>
    %cst_13 = arith.constant 0.000000e+00 : f32
    "tpu.trace_stop"() : () -> ()
    %15 = vector.broadcast %cst_13 : f32 to vector<1x8x32xf32>
    %16 = arith.cmpf ogt, %14, %15 : vector<1x8x32xf32>
    %cst_14 = arith.constant 0.000000e+00 : f32
    %17 = vector.broadcast %cst_14 : f32 to vector<1x8x32xf32>
    %18 = arith.minimumf %14, %17 : vector<1x8x32xf32>
    %19 = math.exp %18 : vector<1x8x32xf32>
    %cst_15 = arith.constant 1.000000e+00 : f32
    %20 = vector.broadcast %cst_15 : f32 to vector<1x8x32xf32>
    %21 = arith.subf %19, %20 : vector<1x8x32xf32>
    %22 = arith.select %16, %14, %21 : vector<1x8x32xi1>, vector<1x8x32xf32>
    %23 = arith.truncf %22 : vector<1x8x32xf32> to vector<1x8x32xbf16>
    %24 = vector.shape_cast %23 : vector<1x8x32xbf16> to vector<8x32xbf16>
    %c0_16 = arith.constant 0 : index
    %c0_17 = arith.constant 0 : index
    %25 = vector.load %arg8[%c0_16, %c0_17] : memref<32x768xbf16, #tpu.memory_space<vmem>>, vector<32x768xbf16>
    %cst_18 = arith.constant dense<0.000000e+00> : vector<8x768xf32>
    %26 = tpu.matmul %24, %25, %cst_18 {dimension_numbers = #tpu.dot_dimension_numbers<[1], [0], [0], [1], [0, 0, 1, 1], [], []>} : vector<8x32xbf16>, vector<32x768xbf16>, vector<8x768xf32> -> vector<8x768xf32>
    %c0_19 = arith.constant 0 : index
    %c0_20 = arith.constant 0 : index
    %27 = vector.load %arg9[%c0_19, %c0_20] : memref<1x768xf32, #tpu.memory_space<vmem>>, vector<1x768xf32>
    %28 = vector.broadcast %27 : vector<1x768xf32> to vector<8x768xf32>
    %29 = arith.addf %26, %28 : vector<8x768xf32>
    %30 = vector.shape_cast %29 : vector<8x768xf32> to vector<1x8x768xf32>
    %c0_21 = arith.constant 0 : index
    %c0_22 = arith.constant 0 : index
    %c0_23 = arith.constant 0 : index
    %31 = vector.load %arg5[%c0_21, %c0_22, %c0_23] : memref<1x1x768xf32, #tpu.memory_space<vmem>>, vector<1x1x768xf32>
    %32 = vector.broadcast %31 : vector<1x1x768xf32> to vector<1x8x768xf32>
    %33 = arith.addf %30, %32 : vector<1x8x768xf32>
    %c0_24 = arith.constant 0 : index
    %c0_25 = arith.constant 0 : index
    %c0_26 = arith.constant 0 : index
    %34 = vector.load %arg3[%c0_24, %c0_25, %c0_26] : memref<1x8x1xf32, #tpu.memory_space<vmem>>, vector<1x8x1xf32>
    %35 = vector.broadcast %34 : vector<1x8x1xf32> to vector<1x8x768xf32>
    %36 = arith.mulf %35, %33 : vector<1x8x768xf32>
    %cst_27 = arith.constant dense<0.000000e+00> : vector<1x768xf32>
    %37 = vector.multi_reduction <add>, %36, %cst_27 [1] : vector<1x8x768xf32> to vector<1x768xf32>
    %38 = vector.shape_cast %37 : vector<1x768xf32> to vector<1x1x768xf32>
    %c0_28 = arith.constant 0 : index
    %c0_29 = arith.constant 0 : index
    %c0_30 = arith.constant 0 : index
    %39 = vector.load %arg10[%c0_28, %c0_29, %c0_30] : memref<1x1x768xf32, #tpu.memory_space<vmem>>, vector<1x1x768xf32>
    tpu.vector_store %arg10[%c0_28, %c0_29, %c0_30], %38 {strides = array<i32>} : memref<1x1x768xf32, #tpu.memory_space<vmem>>, vector<1x1x768xf32>,
    return
  }
  func.func @transform_0(%arg0: i32) -> (i32, i32, i32) {
    %c0_i32 = arith.constant 0 : i32
    %c0_i32_0 = arith.constant 0 : i32
    %c0_i32_1 = arith.constant 0 : i32
    return %arg0, %c0_i32, %c0_i32_0 : i32, i32, i32
  }
  func.func @transform_1(%arg0: i32) -> (i32, i32, i32) {
    %c0_i32 = arith.constant 0 : i32
    %c0_i32_0 = arith.constant 0 : i32
    %c0_i32_1 = arith.constant 0 : i32
    return %arg0, %c0_i32, %c0_i32_0 : i32, i32, i32
  }
  func.func @transform_2(%arg0: i32) -> (i32, i32, i32) {
    %c0_i32 = arith.constant 0 : i32
    %c0_i32_0 = arith.constant 0 : i32
    %c0_i32_1 = arith.constant 0 : i32
    return %arg0, %c0_i32, %c0_i32_0 : i32, i32, i32
  }
  func.func @transform_3(%arg0: i32) -> (i32, i32, i32) {
    %c0_i32 = arith.constant 0 : i32
    %c0_i32_0 = arith.constant 0 : i32
    %c0_i32_1 = arith.constant 0 : i32
    return %arg0, %c0_i32, %c0_i32_0 : i32, i32, i32
  }
  func.func @transform_4(%arg0: i32) -> (i32, i32, i32) {
    %c0_i32 = arith.constant 0 : i32
    %c0_i32_0 = arith.constant 0 : i32
    %c0_i32_1 = arith.constant 0 : i32
    return %arg0, %c0_i32, %c0_i32_0 : i32, i32, i32
  }
  func.func @transform_5(%arg0: i32) -> (i32, i32) {
    %c0_i32 = arith.constant 0 : i32
    %c0_i32_0 = arith.constant 0 : i32
    %c0_i32_1 = arith.constant 0 : i32
    return %c0_i32, %c0_i32_0 : i32, i32
  }
  func.func @transform_6(%arg0: i32) -> (i32, i32) {
    %c0_i32 = arith.constant 0 : i32
    %c0_i32_0 = arith.constant 0 : i32
    %c0_i32_1 = arith.constant 0 : i32
    return %c0_i32, %c0_i32_0 : i32, i32
  }
  func.func @transform_7(%arg0: i32) -> (i32, i32) {
    %c0_i32 = arith.constant 0 : i32
    %c0_i32_0 = arith.constant 0 : i32
    %c0_i32_1 = arith.constant 0 : i32
    return %c0_i32, %c0_i32_0 : i32, i32
  }
  func.func @transform_8(%arg0: i32) -> (i32, i32) {
    %c0_i32 = arith.constant 0 : i32
    %c0_i32_0 = arith.constant 0 : i32
    %c0_i32_1 = arith.constant 0 : i32
    return %c0_i32, %c0_i32_0 : i32, i32
  }
  func.func @transform_9(%arg0: i32) -> (i32, i32, i32) {
    %c0_i32 = arith.constant 0 : i32
    %c0_i32_0 = arith.constant 0 : i32
    %c0_i32_1 = arith.constant 0 : i32
    return %arg0, %c0_i32, %c0_i32_0 : i32, i32, i32
  }
}

</mosaic_0001>

<bundles_post_ra>
// kernel: tpu_custom_call.1
= control target key start
LH: loop header
LB: loop body
LE: loop exit
PB: predicated region body
PF: predicated region fallthrough
CT: control target
= control target key end

     0   :  { %s1697_s0 = inlined_call_operand.vmem [shape: f32[2,8,32], index: 0, kind: input, shape index: {}]   ;;  %s1698_s1 = inlined_call_operand.hbm [shape: bf16[2,8,8], index: 1, kind: input, shape index: {}]   ;;  %s1699_s2 = inlined_call_operand.vmem [shape: f32[2,8,1], index: 2, kind: input, shape index: {}]   ;;  %s1700_s3 = inlined_call_operand.hbm [shape: f32[2,1,32], index: 3, kind: input, shape index: {}]   ;;  %s1701_s4 = inlined_call_operand.hbm [shape: f32[2,1,768], index: 4, kind: input, shape index: {}]   ;;  %s1702_s5 = inlined_call_operand.hbm [shape: bf16[32,32], index: 5, kind: input, shape index: {}]   ;;  %s1703_s6 = inlined_call_operand.vmem [shape: f32[1,32], index: 6, kind: input, shape index: {}]   ;;  %s1704_s7 = inlined_call_operand.hbm [shape: bf16[32,768], index: 7, kind: input, shape index: {}]   ;;  %s1705_s8 = inlined_call_operand.vmem [shape: f32[1,768], index: 8, kind: input, shape index: {}]   ;;  %s1706_s9 = inlined_call_operand.hbm [shape: f32[2,1,768], index: 9, kind: output, shape index: {}]  }
   0x1   :  { %1716 = sst [smem:[#allocation22_spill]] %s1700_s3 }
   0x2   :  { %1717 = sst [smem:[#allocation23_spill]] %s1702_s5 }
   0x3   :  { %1718 = sst [smem:[#allocation24_spill]] %s1704_s7 }
   0x4   :  { %1719 = sst [smem:[#allocation25_spill]] %s1706_s9 }
   0x5   :  { %14 = vsyncpa [#allocation3], 0 }
   0x6   :  { %16 = vsyncpa [#allocation3 + $0x1], 0 }
   0x7   :  { %17 = vsyncpa [#allocation6], 0 }
   0x8   :  { %19 = vsyncpa [#allocation6 + $0x1], 0 }
   0x9   :  { %20 = vsyncpa [#allocation9], 0 }
   0xa   :  { %21 = vsyncpa [#allocation4], 0 }
   0xb   :  { %23 = vsyncpa [#allocation4 + $0x1], 0  ;;  %s1461_s30 = smov 0   ;;  %s1463_s10 = smov 0  }
   0xc   :  { %s1465_s11 = smov 0   ;;  %s1467_s12 = smov 0  }
   0xd LB: > { %1720 = sst [smem:[#allocation16_spill]] %s1390_s30  ;;  %s1485_s16 = sadd.s32 4294967295, %s1402_s12   ;;  %s1402_s12 = sphi %s1467_s12, %s1742_s12   ;;  %s1398_s11 = sphi %s1465_s11, %s1744_s11   ;;  %s1394_s10 = sphi %s1463_s10, %s1746_s10   ;;  %s1390_s30 = sphi %s1461_s30, %s1745_s30  }
   0xe   : > { %1721 = sst [smem:[#allocation17_spill]] %s1398_s11  ;;  %p994_p0 = scmp.ge.s32.totalorder %s1402_s12, 1 }
   0xf   : > { %s1722_s5 = sld [smem:[#allocation23_spill]]  ;;  %p1714_p1 = scmp.eq.s32.totalorder %s1485_s16, 0 }
  0x10   : > { %p274_p2 = scmp.lt.s32.totalorder %s1402_s12, 3  ;;  %s1404_s18 = smov [#allocation8]  }
  0x11   : > { %s287_s19 = sshll.u32 %s1404_s18, 4  ;;  %s1405_s21 = smov 64   ;;  %s288_s19 = int_to_ptr.vmem [resolvable:$true] %s287_s19 }
  0x12   : > { %p1490_p3 = pnand %p994_p0, %p274_p2  ;;  %s1406_s22 = smov 4  }
  0x13   : > { %s993_s23 = sadd.s32 4294967294, %s1402_s12   ;;  %s1507_s24 = sadd.s32 1, %s1402_s12  }
  0x14   : > { %p1107_p4 = pneg %p1490_p3  ;;  %1725 = sst [smem:[#allocation18_spill]] %s1507_s24 }
  0x15   : > { %s285_s15 = sshll.u32 %s1722_s5, 4  ;;  %s62_s25 = sadd.s32 1, %s1398_s11  ;;  %s286_s15 = int_to_ptr.hbm [resolvable:$true] %s285_s15 }
  0x16   : > { %p1499_p6 = pnand %p1107_p4, %p1714_p1  ;;  %s59_s26 = ssub.s32 %s1402_s12, %s1507_s24 }
  0x17   : > { %p69_p7 = scmp.ne.s32.totalorder %s1398_s11, %s1394_s10  ;;  %p60_p8 = scmp.eq.s32.totalorder %s59_s26, 0 }
  0x18   : > { %1110 = dma.hbm_to_vmem [thread:$0]  (!%p1499_p6), %s286_s15, 256, %s288_s19, [#allocation9], %s1405_s21, %s1405_s21, %s1406_s22  }
  0x19   : > { %p70_p9 = scmp.eq.s32.totalorder %s1402_s12, 0  ;;  %p75_p10 = scmp.ne.s32.totalorder %s1394_s10, %s1390_s30 }
  0x1a   : > { %p261_p11 = scmp.eq.s32.totalorder %s1485_s16, 1  ;;  %p267_p2 = scmp.eq.s32.totalorder %s993_s23, 1 }
  0x1b   : > { %s1519_s27 = scalar_select %p60_p8, %s1398_s11, %s62_s25  }
  0x1c   : > { %p71_p12 = por %p70_p9, %p69_p7  ;;  %p1523_p13 = por %p1714_p1, %p75_p10 }
  0x1d   : > { %1726 = sst [smem:[#allocation19_spill]] %s1519_s27  ;;  %p1527_p0 = por %p261_p11, %p69_p7 }
  0x1e   : > { %p1130_p4 = scmp.lt.s32.totalorder %s1402_s12, 2  ;;  %s1533_s13 = sand.u32 1, %s1398_s11  }
  0x1f   : > { %s1728_s29 = scalar_select %p1527_p0, 1, 0 }
  0x20   : > { %p1535_p5 = por %p267_p2, %p75_p10  ;;  %s354_s15 = sand.u32 1, %s1402_s12  }
  0x21   : > { %1729 = sst [smem:[#allocation20_spill]] %s1728_s29  ;;  %p1540_p8 = pnand %p1130_p4, %p71_p12 }
  0x22   : > { %s1730_s14 = scalar_select %p1535_p5, 1, 0 }
  0x23   : > { %s1733_s3 = sld [smem:[#allocation22_spill]]  ;;  %s357_s25 = scalar_lea.vmem [#allocation5], %s1533_s13 }
  0x24   : > { %1731 = sst [smem:[#allocation21_spill]] %s1730_s14  ;;  %s364_s26 = sshll.u32 %s357_s25, 4  ;;  %s365_s26 = int_to_ptr.vmem [resolvable:$true] %s364_s26 }
  0x25   : > { %s1734_s7 = sld [smem:[#allocation24_spill]]  ;;  %s1552_s24 = scalar_lea.sflag [#allocation6], %s354_s15 }
  0x26   : > { %p1212_p9 = pneg %p1540_p8 }
  0x29   : > { %s360_s22 = scalar_lea.hbm %s1733_s3, %s1402_s12 }
  0x2a   : > { %s362_s23 = sshll.u32 %s360_s22, 4  ;;  %s1215_s22 = scalar_lea.hbm %s1733_s3, 2  ;;  %s363_s23 = int_to_ptr.hbm [resolvable:$true] %s362_s23 }
  0x2b   : > { %s302_s11 = sshll.u32 %s1734_s7, 4  ;;  %s1208_s14 = sshra.s32 %s363_s23, 4  ;;  %s1209_s14 = int_to_ptr.hbm [resolvable:$true] %s1208_s14  ;;  %s303_s11 = int_to_ptr.hbm [resolvable:$true] %s302_s11 }
  0x2c   : > { %s1210_s30 = scalar_lea.hbm %s1209_s14, 1  ;;  %p1216_p12 = scmp.lt.s32.totalorder %s1209_s14, %s1733_s3 }
  0x2d   : > { %p1211_p7 = scmp.ne.s32.totalorder %s1209_s14, %s1210_s30  ;;  %p1217_p2 = scmp.lt.s32.totalorder %s1215_s22, %s1210_s30 }
  0x2f   : > { %p1213_p10 = pnand %p1212_p9, %p1211_p7  ;;  %p1218_p4 = por %p1217_p2, %p1216_p12 }
  0x31   : > { %p1214_p11 = pneg %p1213_p10 }
  0x33   : > { %p1219_p1 = pnand %p1218_p4, %p1214_p11 }
  0x35   : > { %1222 = shalt.err (!%p1219_p1)
}
  0x36   : > { %1120 = dma.hbm_to_vmem [thread:$0]  (!%p1540_p8), %s363_s23, 16, %s365_s26, %s1552_s24  }
  0x37   : > { %s1407_s5 = smov [#allocation10]   ;;  %s1408_s15 = smov 384  }
  0x38   : > { %s304_s27 = sshll.u32 %s1407_s5, 4  ;;  %s1409_s29 = smov 24   ;;  %s305_s27 = int_to_ptr.vmem [resolvable:$true] %s304_s27 }
  0x39   : > { %1113 = dma.hbm_to_vmem [thread:$0]  (!%p1499_p6), %s303_s11, 1536, %s305_s27, [#allocation9], %s1408_s15, %s1408_s15, %s1409_s29  }
  0x3a   : > { %s998_s30 = sshll.u32 %s1533_s13, 2  ;;  %s999_s14 = sshll.u32 %s1402_s12, 2 }
  0x3b   : > { %s336_s22 = scalar_lea.hbm %s1698_s1, %s999_s14  ;;  %s332_s25 = scalar_lea.vmem [#allocation2], %s998_s30 }
  0x3c   : > { %s340_s3 = sshll.u32 %s332_s25, 4  ;;  %s338_s23 = sshll.u32 %s336_s22, 4  ;;  %s341_s3 = int_to_ptr.vmem [resolvable:$true] %s340_s3  ;;  %s339_s23 = int_to_ptr.hbm [resolvable:$true] %s338_s23 }
  0x3d   : > { %s1087_s26 = smul.u32 6, %s1533_s13  ;;  %s329_s7 = scalar_lea.sflag [#allocation3], %s1533_s13 }
  0x3e   : > { %s1268_s5 = sshra.s32 %s339_s23, 4  ;;  %s1275_s27 = scalar_lea.hbm %s1698_s1, 8  ;;  %s1269_s5 = int_to_ptr.hbm [resolvable:$true] %s1268_s5 }
  0x3f   : > { %s1270_s9 = scalar_lea.hbm %s1269_s5, 4  ;;  %p1276_p10 = scmp.lt.s32.totalorder %s1269_s5, %s1698_s1 }
  0x40   : > { %p1271_p1 = scmp.ne.s32.totalorder %s1269_s5, %s1270_s9  ;;  %p1277_p11 = scmp.lt.s32.totalorder %s1275_s27, %s1270_s9 }
  0x42   : > { %p1273_p6 = pnand %p1271_p1, %p1212_p9  ;;  %p1278_p12 = por %p1277_p11, %p1276_p10 }
  0x44   : > { %p1274_p7 = pneg %p1273_p6 }
  0x46   : > { %p1279_p2 = pnand %p1278_p12, %p1274_p7 }
  0x48   : > { %1282 = shalt.err (!%p1279_p2)
}
  0x49   : > { %1117 = dma.hbm_to_vmem [thread:$0]  (!%p1540_p8), %s339_s23, 64, %s341_s3, %s329_s7  }
  0x4a   : > { %s1088_s13 = smul.u32 6, %s1402_s12  ;;  %s375_s30 = scalar_lea.vmem [#allocation7], %s1087_s26 }
  0x4b   : > { %s383_s14 = sshll.u32 %s375_s30, 4  ;;  %s1305_s7 = scalar_lea.hbm %s1701_s4, 12  ;;  %s384_s14 = int_to_ptr.vmem [resolvable:$true] %s383_s14 }
  0x4c   : > { %s379_s22 = scalar_lea.hbm %s1701_s4, %s1088_s13 }
  0x4d   : > { %s381_s25 = sshll.u32 %s379_s22, 4  ;;  %s382_s25 = int_to_ptr.hbm [resolvable:$true] %s381_s25 }
  0x4e   : > { %s1298_s5 = sshra.s32 %s382_s25, 4  ;;  %s1299_s5 = int_to_ptr.hbm [resolvable:$true] %s1298_s5 }
  0x4f   : > { %s1300_s9 = scalar_lea.hbm %s1299_s5, 6  ;;  %p1306_p7 = scmp.lt.s32.totalorder %s1299_s5, %s1701_s4 }
  0x50   : > { %p1301_p4 = scmp.ne.s32.totalorder %s1299_s5, %s1300_s9  ;;  %p1307_p10 = scmp.lt.s32.totalorder %s1305_s7, %s1300_s9 }
  0x52   : > { %p1303_p1 = pnand %p1301_p4, %p1212_p9  ;;  %p1308_p11 = por %p1307_p10, %p1306_p7 }
  0x54   : > { %p1304_p6 = pneg %p1303_p1 }
  0x56   : > { %p1309_p12 = pnand %p1308_p11, %p1304_p6 }
  0x58   : > { %1312 = shalt.err (!%p1309_p12)
}
  0x59   : > { %1123 = dma.hbm_to_vmem [thread:$0]  (!%p1540_p8), %s382_s25, 96, %s384_s14, %s1552_s24  }
  0x5a   : > { %392 = sbr.rel (%p1490_p3) target bundleno = 564 (0x234), region = 56  ;;  %s1607_s20 = sand.u32 (!%p1490_p3), 1, %s1394_s10  }
  0x5b   : > { %s1001_s27 = sshll.u32 (!%p1490_p3), %s1607_s20, 2  ;;  %s395_s15 = scalar_lea.sflag (!%p1490_p3), [#allocation3], %s1607_s20 }
  0x5c   : > { %s1611_s29 = scalar_lea.vmem (!%p1490_p3), [#allocation2], %s1001_s27 }
  0x5f   : > { %1373 = dma.done.wait (%p1523_p13), %s395_s15, 64  }
  0x60   : > { %1375 = vsyncadd (%p1523_p13), %s395_s15, 4294967232  ;;  %s404_s17 = sand.u32 1, %s1485_s16   ;;  %s407_s18 = scalar_lea.vmem [#allocation5], %s1607_s20 }
  0x61   : > { %s405_s24 = scalar_lea.sflag [#allocation6], %s404_s17 }
  0x62   : > { %1377 = dma.done.wait (%p1523_p13), %s405_s24, 112  }
  0x63   : > { %1379 = vsyncadd (%p1523_p13), %s405_s24, 4294967184  ;;  %s1089_s13 = smul.u32 6, %s1607_s20  ;;  %p1735_p3 = scmp.eq.s32.totalorder %s1485_s16, 0 }
  0x65   : > { %s1626_s30 = scalar_lea.vmem [#allocation7], %s1089_s13 }
  0x66   : > { %1381 = dma.done.wait (%p1735_p3), [#allocation9], 1792   ;;  %p1736_p8 = pmov %p1735_p3 }
  0x67   : > { %p480_p9 = scmp.lt.s32.totalorder %s1485_s16, 1  ;;  %v1074_v0 = vld [vmem:[#allocation8 + $0x8] sm:$0xff]  ;;  %v1073_v1 = vld [vmem:[#allocation8] sm:$0xff]  ;;  %vm512_vm0 = vcmask 261120   ;;  %vm539_vm1 = vcmask 1043456   ;;  %vm535_vm2 = vcmask 64512  }
  0x68   : > { %1383 = vsyncadd (%p1736_p8), [#allocation9], 4294965504  ;;  %522 = vmatpush.bf16.msra.mxu0 %v1074_v0  ;;  %v1174_v4 = vld [vmem:[%s1703_s6] ss:$0 sm:$0xff]  ;;  %v1043_v13 = vld [vmem:[#allocation10 + $0x30] sm:$0xf] }
  0x69   : > { %s1634_s14 = scalar_select %p480_p9, %s1485_s16, 1  ;;  %v1175_v5 = vld [vmem:[%s407_s18] ss:$0 sm:$0xff]  ;;  %v1084_v14 = vld [vmem:[#allocation10 + $0x44] sm:$0xf0]  ;;  %v1410_v49 = vmov 0  }
  0x6a   : > { %v489_v12 = vld [vmem:[%s1611_s29] sm:$0xf]  ;;  %v1081_v15 = vld [vmem:[#allocation10 + $0x34] sm:$0xf]  ;;  %v1044_v16 = vor.u32 %v1084_v14, %v1043_v13  ;;  %v1045_v17 = vld [vmem:[#allocation10 + $0x48] sm:$0xf0]  ;;  %1173 = vset.pattern.permute.xlu0 %v1410_v49 }
  0x6b   : > { %s1004_s28 = sshll.u32 %s1634_s14, 3  ;;  %v1051_v18 = vld [vmem:[#allocation10 + $0x38] sm:$0xf]  ;;  %v1085_v19 = vld [vmem:[#allocation10 + $0x4c] sm:$0xf0]  ;;  %v1048_v20 = vor.u32 %v1081_v15, %v1045_v17  ;;  %s1090_s26 = smul.u32 6, %s1485_s16 }
  0x6c   : > { %s483_s22 = scalar_lea.vmem %s1697_s0, %s1004_s28  ;;  %523 = vmatpush.bf16.msra.mxu0 %v1073_v1  ;;  %v1052_v21 = vor.u32 %v1085_v19, %v1051_v18  ;;  %v1082_v22 = vld [vmem:[#allocation10 + $0x3c] sm:$0xf]  ;;  %v1053_v23 = vld [vmem:[#allocation10 + $0x50] sm:$0xf0]  ;;  %658 = vmatpush.bf16.msra.mxu2 %v1044_v16  ;;  %v1019_v25 = vld [vmem:[#allocation10] sm:$0xf]  ;;  %s487_s3 = scalar_lea.vmem %s1699_s2, %s1004_s28 }
  0x6d   : > { %v490_v2 = vld [vmem:[%s483_s22] sm:$0xff]  ;;  %v1056_v24 = vor.u32 %v1082_v22, %v1053_v23  ;;  %671 = vmatpush.bf16.msra.mxu3 %v1048_v20  ;;  %v1075_v27 = vld [vmem:[#allocation10 + $0x4] sm:$0xf]  ;;  %v1027_v30 = vld [vmem:[#allocation10 + $0x8] sm:$0xf]  ;;  %vm809_vm4 = vcmask 1040384  }
  0x6e   : > { %v491_v3 = vpack.c.bf16 %v490_v2, %v490_v2  ;;  %v1078_v26 = vld [vmem:[#allocation10 + $0x14] sm:$0xf0]  ;;  %v1021_v29 = vld [vmem:[#allocation10 + $0x18] sm:$0xf0]  ;;  %v1079_v31 = vld [vmem:[#allocation10 + $0x1c] sm:$0xf0] }
  0x6f   : > { %v1020_v28 = vor.u32 %v1078_v26, %v1019_v25  ;;  %v1024_v32 = vor.u32 %v1075_v27, %v1021_v29  ;;  %v1028_v33 = vor.u32 %v1079_v31, %v1027_v30  ;;  %v1076_v34 = vld [vmem:[#allocation10 + $0xc] sm:$0xf]  ;;  %v1029_v35 = vld [vmem:[#allocation10 + $0x20] sm:$0xf0]  ;;  %v1059_v37 = vld [vmem:[#allocation10 + $0x40] sm:$0xf] }
  0x70   : > { %1014 = vmatmul.msk.bf16.vlgmr.msra.gmra.mxu0 %vm512_vm0, %v491_v3  ;;  %v1032_v36 = vor.u32 %v1076_v34, %v1029_v35  ;;  %v1086_v38 = vld [vmem:[#allocation10 + $0x54] sm:$0xf0]  ;;  %v1083_v39 = vld [vmem:[#allocation10 + $0x44] sm:$0xf]  ;;  %v1061_v41 = vld [vmem:[#allocation10 + $0x58] sm:$0xf0] }
  0x71   : > { %697 = vmatpush.bf16.msrb.mxu0 %v1056_v24  ;;  %659 = vmatpush.bf16.msra.mxu2 %v1020_v28  ;;  %v1060_v40 = vor.u32 %v1086_v38, %v1059_v37  ;;  %v1035_v42 = vld [vmem:[#allocation10 + $0x10] sm:$0xf]  ;;  %v1080_v43 = vld [vmem:[#allocation10 + $0x24] sm:$0xf0]  ;;  %v1064_v44 = vor.u32 %v1083_v39, %v1061_v41  ;;  %v1077_v45 = vld [vmem:[#allocation10 + $0x14] sm:$0xf] }
  0x72   : > { %672 = vmatpush.bf16.msra.mxu3 %v1024_v32  ;;  %v1037_v46 = vld [vmem:[#allocation10 + $0x28] sm:$0xf0]  ;;  %v750_v47 = vld [vmem:[%s487_s3] sm:$0xff]  ;;  %v1036_v48 = vor.u32 %v1080_v43, %v1035_v42  ;;  %s1737_s29 = sld [smem:[#allocation25_spill]]  ;;  %vm811_vm5 = vcmask 1041408   ;;  %vm813_vm6 = vcmask 1043459  }
  0x73   : > { %v1040_v50 = vor.u32 %v1077_v45, %v1037_v46  ;;  %753 = vperm.xlu0 %1173, %v750_v47   ;;  %v575_v59 = vld [vmem:[%s1705_s8] sm:$0x3f]  ;;  %v730_v0 = vld [vmem:[%s1626_s30] sm:$0x3f]  ;;  %vm815_vm7 = vcmask 1044483   ;;  %s479_s16 = scalar_lea.vmem [#allocation11], %s1089_s13 }
  0x74   : > { %v580_v61 = vperm.slane %v575_v59, 3  ;;  %v579_v63 = vperm.slane %v575_v59, 2  ;;  %v577_v1 = vperm.slane %v575_v59, 0  ;;  %v578_v2 = vperm.slane %v575_v59, 1  ;;  %s838_s24 = sshll.u32 %s479_s16, 4  ;;  %s826_s14 = scalar_lea.sflag [#allocation4], %s1607_s20  ;;  %s839_s24 = int_to_ptr.vmem [resolvable:$true] %s838_s24 }
  0x75   : > { %698 = vmatpush.bf16.msrb.mxu0 %v1032_v36  ;;  %710 = vmatpush.bf16.msrb.mxu2 %v1060_v40  ;;  %v581_v31 = vperm.slane %v575_v59, 4  ;;  %v582_v32 = vperm.slane %v575_v59, 5  ;;  %v736_v35 = vperm.slane %v730_v0, 4  ;;  %v737_v36 = vperm.slane %v730_v0, 5 }
  0x76   : > { %723 = vmatpush.bf16.msrb.mxu3 %v1064_v44  ;;  %vm817_vm8 = vcmask 1042432  }
  0x78   : > { %s836_s17 = scalar_lea.hbm %s1737_s29, %s1090_s26  ;;  %s1348_s22 = scalar_lea.hbm %s1737_s29, 12 }
  0x79   : > { %711 = vmatpush.bf16.msrb.mxu2 %v1036_v48  ;;  %s840_s18 = sshll.u32 %s836_s17, 4  ;;  %s841_s18 = int_to_ptr.hbm [resolvable:$true] %s840_s18 }
  0x7a   : > { %724 = vmatpush.bf16.msrb.mxu3 %v1040_v50  ;;  %s1342_s28 = sshra.s32 %s841_s18, 4  ;;  %s1343_s28 = int_to_ptr.hbm [resolvable:$true] %s1342_s28 }
  0x7b   : > { %s1344_s19 = scalar_lea.hbm %s1343_s28, 6  ;;  %p1349_p1 = scmp.lt.s32.totalorder %s1343_s28, %s1737_s29 }
  0x7c   : > { %p1345_p13 = scmp.ne.s32.totalorder %s1343_s28, %s1344_s19  ;;  %p1350_p6 = scmp.lt.s32.totalorder %s1348_s22, %s1344_s19 }
  0x7e   : > { %p1346_p2 = pnand %p1345_p13, %p1527_p0  ;;  %p1351_p7 = por %p1350_p6, %p1349_p1 }
  0x80   : > { %p1347_p4 = pneg %p1346_p2 }
  0x82   : > { %p1352_p10 = pnand %p1351_p7, %p1347_p4 }
  0xe5   : > { %v754_v18 = vpop.permute.xlu0 %753 }
  0xed   : > { %v525_v6 = vpop.f32.mrf.mxu0 }
  0xee   : > { %v526_v7 = vadd.f32 %v1174_v4, %v525_v6  ;;  %v735_v4 = vperm.slane %v730_v0, 3 }
  0xf0   : > { %v533_v8 = vadd.f32 %v1175_v5, %v526_v7  ;;  %v733_v5 = vperm.slane %v730_v0, 1  ;;  %v734_v7 = vperm.slane %v730_v0, 2 }
  0xf2   : > { %v534_v9 = vpack.c.bf16 %v533_v8, %v533_v8 }
  0xf4   : > { %v541_v10 = vsel %vm539_vm1, %v534_v9, 0 }
  0xf5   : > { %v527_v11 = vpop.f32.mrf.mxu0  ;;  %550 = vmatpush.bf16.msra.mxu1 %v541_v10 }
  0xf6   : > { %v732_v11 = vperm.slane %v730_v0, 0 }
  0xf8   : > { %1015 = vmatmul.msk.bf16.vlgmr.msra.gmra.mxu1 %vm535_vm2, %v489_v12 }
  0xf9   : > { %684 = vmatpush.bf16.msrb.mxu1 %v1052_v21 }
  0xfd   : > { %685 = vmatpush.bf16.msrb.mxu1 %v1028_v33 }
 0x175   : > { %v552_v51 = vpop.f32.mrf.mxu1 }
 0x176   : > { %v557_v52 = vmin.f32 %v552_v51, 0.0  ;;  %vm556_vm3 = vcmp.gt.f32.partialorder %v552_v51, 0.0 }
 0x178   : > { %v558_v53 = vmul.f32 1.442695, %v557_v52 }
 0x17a   : > { %1176 = vpow2.f32 %v558_v53 }
 0x17d   : > { %v554_v54 = vpop.f32.mrf.mxu1 }
 0x180   : > { %v1177_v55 = vpop.eup %1176 }
 0x181   : > { %v1016_v56 = vadd.f32 -1.0, %v1177_v55 }
 0x183   : > { %v561_v57 = vsel %vm556_vm3, %v552_v51, %v1016_v56 }
 0x184   : > { %v562_v58 = vpack.c.bf16 %v561_v57, %v561_v57 }
 0x186   : > { %1065 = vmatmul.msk.bf16.vlgmr.msra.gmra.mxu2 %vm512_vm0, %v562_v58  ;;  %1066 = vmatmul.msk.bf16.vlgmr.msra.gmra.mxu3 %vm512_vm0, %v562_v58 }
 0x187   : > { %1067 = vmatmul.msk.bf16.vlgmr.msrb.gmra.mxu1 %vm512_vm0, %v562_v58  ;;  %1068 = vmatmul.msk.bf16.vlgmr.msrb.gmra.mxu0 %vm512_vm0, %v562_v58 }
 0x196   : > { %1069 = vmatmul.msk.bf16.vlgmr.msrb.gmra.mxu2 %vm512_vm0, %v562_v58  ;;  %1070 = vmatmul.msk.bf16.vlgmr.msrb.gmra.mxu3 %vm512_vm0, %v562_v58 }
 0x204   : > { %v687_v60 = vpop.f32.mrf.mxu1  ;;  %v700_v62 = vpop.f32.mrf.mxu0 }
 0x205   : > { %v701_v3 = vadd.f32 %v700_v62, %v580_v61  ;;  %v688_v6 = vadd.f32 %v687_v60, %v579_v63 }
 0x207   : > { %v747_v13 = vadd.f32 %v735_v4, %v701_v3  ;;  %v746_v17 = vadd.f32 %v734_v7, %v688_v6 }
 0x209   : > { %v661_v8 = vpop.f32.mrf.mxu2  ;;  %v674_v9 = vpop.f32.mrf.mxu3  ;;  %v759_v21 = vmul.f32 %v754_v18, %v747_v13  ;;  %v758_v23 = vmul.f32 %v754_v18, %v746_v17  ;;  %v820_v13 = vlaneseq }
 0x20a   : > { %v662_v10 = vadd.f32 %v661_v8, %v577_v1  ;;  %v675_v12 = vadd.f32 %v674_v9, %v578_v2 }
 0x20b   : > { %v780_v27 = vrot.slane %v759_v21, 4  ;;  %v774_v29 = vrot.slane %v758_v23, 4  ;;  %vm822_vm9 = vcmp.lt.s32.totalorder %v820_v13, 768 }
 0x20c   : > { %v745_v14 = vadd.f32 %v733_v5, %v675_v12  ;;  %v689_v15 = vpop.f32.mrf.mxu1  ;;  %v702_v16 = vpop.f32.mrf.mxu0  ;;  %v744_v19 = vadd.f32 %v732_v11, %v662_v10 }
 0x20d   : > { %v781_v33 = vadd.f32 %v780_v27, %v759_v21  ;;  %v775_v37 = vadd.f32 %v774_v29, %v758_v23 }
 0x20e   : > { %v757_v20 = vmul.f32 %v754_v18, %v745_v14  ;;  %v756_v26 = vmul.f32 %v754_v18, %v744_v19 }
 0x20f   : > { %v782_v43 = vrot.slane %v781_v33, 2  ;;  %v776_v47 = vrot.slane %v775_v37, 2 }
 0x210   : > { %v768_v22 = vrot.slane %v757_v20, 4  ;;  %v762_v30 = vrot.slane %v756_v26, 4 }
 0x211   : > { %v663_v24 = vpop.f32.mrf.mxu2  ;;  %v676_v25 = vpop.f32.mrf.mxu3  ;;  %v783_v51 = vadd.f32 %v782_v43, %v781_v33  ;;  %v777_v55 = vadd.f32 %v776_v47, %v775_v37 }
 0x212   : > { %v769_v28 = vadd.f32 %v768_v22, %v757_v20  ;;  %v763_v40 = vadd.f32 %v762_v30, %v756_v26 }
 0x213   : > { %v784_v61 = vrot.slane %v783_v51, 1  ;;  %v778_v1 = vrot.slane %v777_v55, 1 }
 0x214   : > { %v770_v34 = vrot.slane %v769_v28, 2  ;;  %v764_v48 = vrot.slane %v763_v40, 2 }
 0x215   : > { %v785_v5 = vadd.f32 %v784_v61, %v783_v51  ;;  %v779_v9 = vadd.f32 %v778_v1, %v777_v55 }
 0x216   : > { %v771_v44 = vadd.f32 %v770_v34, %v769_v28  ;;  %v765_v58 = vadd.f32 %v764_v48, %v763_v40 }
 0x217   : > { %v806_v14 = vrot.slane %v785_v5, 5 }
 0x218   : > { %v772_v52 = vrot.slane %v771_v44, 1  ;;  %v766_v2 = vrot.slane %v765_v58, 1 }
 0x219   : > { %v713_v38 = vpop.f32.mrf.mxu2  ;;  %v726_v39 = vpop.f32.mrf.mxu3 }
 0x21a   : > { %v714_v41 = vadd.f32 %v713_v38, %v581_v31  ;;  %v727_v42 = vadd.f32 %v726_v39, %v582_v32  ;;  %v773_v62 = vadd.f32 %v772_v52, %v771_v44  ;;  %v767_v10 = vadd.f32 %v766_v2, %v765_v58 }
 0x21c   : > { %v748_v45 = vadd.f32 %v736_v35, %v714_v41  ;;  %v749_v46 = vadd.f32 %v737_v36, %v727_v42  ;;  %v804_v6 = vrot.slane %v773_v62, 7 }
 0x21e   : > { %v760_v49 = vmul.f32 %v754_v18, %v748_v45  ;;  %v761_v50 = vmul.f32 %v754_v18, %v749_v46  ;;  %v810_v17 = vsel %vm809_vm4, %v767_v10, %v804_v6  ;;  %v805_v18 = vrot.slane %v779_v9, 6 }
 0x220   : > { %v786_v53 = vrot.slane %v760_v49, 4  ;;  %v792_v54 = vrot.slane %v761_v50, 4  ;;  %v812_v20 = vsel %vm811_vm5, %v810_v17, %v805_v18 }
 0x221   : > { %v715_v56 = vpop.f32.mrf.mxu2  ;;  %v728_v57 = vpop.f32.mrf.mxu3 }
 0x222   : > { %v787_v59 = vadd.f32 %v786_v53, %v760_v49  ;;  %v793_v60 = vadd.f32 %v792_v54, %v761_v50 }
 0x224   : > { %v788_v63 = vrot.slane %v787_v59, 2  ;;  %v794_v0 = vrot.slane %v793_v60, 2 }
 0x226   : > { %v789_v3 = vadd.f32 %v788_v63, %v787_v59  ;;  %v795_v4 = vadd.f32 %v794_v0, %v793_v60 }
 0x228   : > { %v790_v7 = vrot.slane %v789_v3, 1  ;;  %v796_v8 = vrot.slane %v795_v4, 1 }
 0x22a   : > { %v791_v11 = vadd.f32 %v790_v7, %v789_v3  ;;  %v797_v12 = vadd.f32 %v796_v8, %v795_v4 }
 0x22c   : > { %v807_v15 = vrot.slane %v791_v11, 4  ;;  %v808_v16 = vrot.slane %v797_v12, 3 }
 0x22e   : > { %v814_v19 = vsel %vm813_vm6, %v806_v14, %v807_v15 }
 0x22f   : > { %v816_v21 = vsel %vm815_vm7, %v814_v19, %v808_v16 }
 0x230   : > { %v818_v22 = vsel %vm817_vm8, %v812_v20, %v816_v21 }
 0x231   : > { %824 = vst.msk [vmem:[%s479_s16] sm:$0x3f] %vm822_vm9, %v818_v22 }
 0x232   : > { %1355 = shalt.err (!%p1352_p10)
}
 0x233   : > { %1105 = dma.vmem_to_hbm [thread:$0]  (%p1527_p0), %s839_s24, 96, %s841_s18, %s826_s14  }
 0x234 PF: > { %s1739_s20 = sld [smem:[#allocation16_spill]]  ;;  %p1741_p11 = scmp.ge.s32.totalorder %s1402_s12, 2 }
 0x236   : > { %p1125_p12 = pnand %p1741_p11, %p1535_p5 }
 0x238   : > { %p1126_p3 = pneg %p1125_p12 }
 0x23a   : > { %s852_s11 = sand.u32 1, %s1739_s20  }
 0x23b   : > { %s853_s3 = scalar_lea.sflag [#allocation4], %s852_s11 }
 0x23c   : > { %1385 = dma.done.wait (%p1126_p3), %s853_s3, 96  }
 0x23d   : > { %1387 = vsyncadd (%p1126_p3), %s853_s3, 4294967200  ;;  %s1742_s12 = sld [smem:[#allocation18_spill]]  ;;  %s1745_s30 = smov %s1394_s10 }
 0x23e   : > { %s1743_s7 = sld [smem:[#allocation17_spill]] }
 0x23f   : > { %s1744_s11 = sld [smem:[#allocation19_spill]] }
 0x243   : > { %p26_p8 = scmp.ge.s32.totalorder %s1742_s12, 4  }
 0x244   : > { %s1746_s10 = smov %s1743_s7 }
 0x245   :  { %28 = sbr.rel (!%p26_p8) target bundleno = 13 (0xd), region = 139 }
 0x24a   :  { %859 = vsyncpa [#allocation3], 1 }
 0x24b   :  { %861 = vsyncpa [#allocation3 + $0x1], 1 }
 0x24c   :  { %862 = vsyncpa [#allocation6], 1 }
 0x24d   :  { %864 = vsyncpa [#allocation6 + $0x1], 1 }
 0x24e   :  { %865 = vsyncpa [#allocation9], 1 }
 0x24f   :  { %866 = vsyncpa [#allocation4], 1 }
 0x250   :  { %868 = vsyncpa [#allocation4 + $0x1], 1 }

</bundles_post_ra>
